<compile_context>
chip_gen: v5e
topology: v5e:2x2
jax: 0.10.0
libtpu: 0.0.40
codegen_flags: <defaults>
</compile_context>

<pallas_src>
import math

import jax
import jax.numpy as jnp
from jax.experimental import pallas as pl
from jax.experimental.pallas import tpu as pltpu


# ----------------------------------------------------------------------------
# Kernel: pure broadcast add (works for both the 3-D and the flattened path).
# ----------------------------------------------------------------------------
def _pe_add_kernel(x_ref, pe_ref, o_ref):
    # 3-D path:  x (r_blk, b_blk, D) + pe (r_blk, 1, D)  -> sublane broadcast.
    # 2-D path:  x (r_blk, l_blk)    + pe (r_blk, l_blk) -> plain add.
    o_ref[...] = x_ref[...] + pe_ref[...]


# ----------------------------------------------------------------------------
# Exact PE table (matches the PyTorch buffer construction, f32).
# ----------------------------------------------------------------------------
def _build_pe_table(length: int, d_model: int) -> jnp.ndarray:
    position = jnp.arange(length, dtype=jnp.float32)[:, None]
    div_term = jnp.exp(jnp.arange(0, d_model, 2, dtype=jnp.float32)
                       * (-math.log(10000.0) / d_model))
    pe = jnp.zeros((length, d_model), dtype=jnp.float32)
    pe = pe.at[:, 0::2].set(jnp.sin(position * div_term))
    pe = pe.at[:, 1::2].set(jnp.cos(position * div_term))
    return pe  # (length, d_model)


def _build_pe_reference(max_len: int, d_model: int) -> jnp.ndarray:
    return _build_pe_table(max_len, d_model)[:, None, :]  # (L, 1, D)


# ----------------------------------------------------------------------------
# Block sizing (~target_bytes per x buffer, (8,128)-friendly, >=2 row blocks
# whenever rows allow so both v7x TensorCores get work).
# ----------------------------------------------------------------------------
def _choose_blocks_3d(S, B, D, itemsize, target_bytes):
    row_bytes = B * D * itemsize
    if row_bytes <= target_bytes:
        b_blk = B
        r_blk = min(S, max(1, target_bytes // row_bytes))
        if S >= 2 and pl.cdiv(S, r_blk) < 2:      # megacore: >= 2 row blocks
            r_blk = pl.cdiv(S, 2)
    else:
        r_blk = 1                                  # many row blocks already
        b_budget = max(1, target_bytes // (D * itemsize))
        b_blk = B if b_budget >= B else min(B, max(8, (b_budget // 8) * 8))
    return r_blk, b_blk


def _choose_blocks_2d(rows, lanes, itemsize, target_bytes):
    lane_mult = 128
    row_mult = max(8, 32 // itemsize)              # 8 (f32), 16 (bf16), 32 (i8)
    max_lanes = max(lane_mult,
                    (target_bytes // (row_mult * itemsize)) // lane_mult * lane_mult)
    l_blk = lanes if lanes <= max_lanes else max_lanes
    r_budget = max(1, target_bytes // (l_blk * itemsize))
    r_blk = rows if r_budget >= rows else max(row_mult, (r_budget // row_mult) * row_mult)
    # megacore: split rows into >= 2 blocks when they are large enough.
    if r_blk == rows and rows >= 2 * row_mult:
        half = ((rows + 1) // 2 + row_mult - 1) // row_mult * row_mult
        if half < rows:
            r_blk = half
    return r_blk, l_blk


# ----------------------------------------------------------------------------
# Wrapper
# ----------------------------------------------------------------------------
def positional_encoding_forward(x: jnp.ndarray, *, alias_input: bool = False,
                                target_bytes: int = 2 * 1024 * 1024) -> jnp.ndarray:
    """x: (S, B, D). Returns x + pe[:S] (dropout p=0 is the identity)."""
    S, B, D = x.shape
    assert D % 2 == 0, "d_model must be even (same assumption as the PyTorch module)"

    # Exact table for the rows we actually use (identical to the PyTorch buffer
    # for S <= max_len; extrapolates benignly beyond it).
    pe_sd = _build_pe_table(S, D)                       # (S, D) f32
    itemsize = jnp.dtype(x.dtype).itemsize
    flops = S * B * D                                    # one add per element

    alias = {0: 0} if alias_input else {}

    if D >= 128:
        # --- 3-D path: pe read once per row block, broadcast over batch. ---
        r_blk, b_blk = _choose_blocks_3d(S, B, D, itemsize, target_bytes)
        grid = (pl.cdiv(S, r_blk), pl.cdiv(B, b_blk))
        pe3 = pe_sd[:, None, :].astype(x.dtype)          # (S, 1, D)
        bytes_accessed = itemsize * (2 * S * B * D + S * D)
        out = pl.pallas_call(
            _pe_add_kernel,
            out_shape=jax.ShapeDtypeStruct((S, B, D), x.dtype),
            grid=grid,
            in_specs=[
                pl.BlockSpec((r_blk, b_blk, D), lambda i, j: (i, j, 0)),  # x
                pl.BlockSpec((r_blk, 1, D), lambda i, j: (i, 0, 0)),      # pe
            ],
            out_specs=pl.BlockSpec((r_blk, b_blk, D), lambda i, j: (i, j, 0)),
            compiler_params=pltpu.CompilerParams(
                dimension_semantics=("parallel", "parallel")),
            cost_estimate=pl.CostEstimate(flops=flops, transcendentals=0,
                                          bytes_accessed=bytes_accessed),
            input_output_aliases=alias,
        )(x, pe3)
        return out

    # --- Flattened lane-dense path for narrow D (< 128). -------------------
    # TODO(synk): for B*D < 128 one could additionally fold rows into the lane
    # dim to avoid masked stores; shapes there are tiny so it is not done here.
    rows, lanes = S, B * D
    x2 = x.reshape(rows, lanes)
    pe2 = jnp.tile(pe_sd, (1, B)).astype(x.dtype)        # (S, B*D), lane l -> d = l % D
    r_blk, l_blk = _choose_blocks_2d(rows, lanes, itemsize, target_bytes)
    grid = (pl.cdiv(rows, r_blk), pl.cdiv(lanes, l_blk))
    bytes_accessed = itemsize * 3 * S * B * D
    out2 = pl.pallas_call(
        _pe_add_kernel,
        out_shape=jax.ShapeDtypeStruct((rows, lanes), x.dtype),
        grid=grid,
        in_specs=[
            pl.BlockSpec((r_blk, l_blk), lambda i, j: (i, j)),   # x
            pl.BlockSpec((r_blk, l_blk), lambda i, j: (i, j)),   # pe (tiled)
        ],
        out_specs=pl.BlockSpec((r_blk, l_blk), lambda i, j: (i, j)),
        compiler_params=pltpu.CompilerParams(
            dimension_semantics=("parallel", "parallel")),
        cost_estimate=pl.CostEstimate(flops=flops, transcendentals=0,
                                      bytes_accessed=bytes_accessed),
        input_output_aliases=alias,
    )(x2, pe2)
    return out2.reshape(S, B, D)
    # TODO(synk): dropout with p>0 would need pltpu.prng_seed +
    # pltpu.stateful_bernoulli inside the kernel; module default p=0 -> identity.


if __name__ == "__main__":
    key = jax.random.PRNGKey(0)

    # Small shape consistent with the module (seq-first: S, B, D) -> flat path.
    S, B, D = 8, 2, 32
    x = jax.random.normal(key, (S, B, D), dtype=jnp.float32)
    out = jax.block_until_ready(positional_encoding_forward(x))
    ref = x + _build_pe_reference(100, D)[:S]
    assert out.shape == (S, B, D)
    assert jnp.allclose(out, ref, atol=1e-5), "mismatch vs reference (flat path)"

    # Larger shape -> 3-D path, >= 2 row blocks, aliased output buffer.
    x2 = jax.random.normal(jax.random.PRNGKey(1), (64, 4, 256), dtype=jnp.float32)
    out2 = jax.block_until_ready(positional_encoding_forward(x2, alias_input=True))
    ref2 = x2 + _build_pe_reference(64, 256)[:64]
    assert jnp.allclose(out2, ref2, atol=1e-5), "mismatch vs reference (3-D path)"

    # bf16 input -> native-dtype add inside the kernel (pe cast to bf16).
    x3 = jax.random.normal(jax.random.PRNGKey(2), (32, 8, 128), dtype=jnp.bfloat16)
    out3 = jax.block_until_ready(positional_encoding_forward(x3))
    ref3 = x3.astype(jnp.float32) + _build_pe_reference(32, 128)[:32]
    assert jnp.allclose(out3.astype(jnp.float32), ref3, atol=6e-2), "mismatch (bf16)"

    print("KERNEL_OK")
</pallas_src>

<mosaic_0001>
module attributes {stable_mosaic.version = 11 : i64} {
  func.func @_pe_add_kernel(%arg0: i32, %arg1: i32, %arg2: memref<8x64xf32, #tpu.memory_space<vmem>>, %arg3: memref<8x64xf32, #tpu.memory_space<vmem>>, %arg4: memref<8x64xf32, #tpu.memory_space<vmem>>) attributes {dimension_semantics = [#tpu.dimension_semantics<parallel>, #tpu.dimension_semantics<parallel>], iteration_bounds = array<i64: 1, 1>, scalar_prefetch = 0 : i64, scratch_operands = 0 : i64, tpu.core_type = #tpu.core_type<tc>, window_params = [{transform_indices = @transform_0, window_bounds = array<i64: 8, 64>}, {transform_indices = @transform_1, window_bounds = array<i64: 8, 64>}, {transform_indices = @transform_2, window_bounds = array<i64: 8, 64>}]} {
    %c0 = arith.constant 0 : index
    %c0_0 = arith.constant 0 : index
    %0 = vector.load %arg2[%c0, %c0_0] : memref<8x64xf32, #tpu.memory_space<vmem>>, vector<8x64xf32>
    %c0_1 = arith.constant 0 : index
    %c0_2 = arith.constant 0 : index
    %1 = vector.load %arg3[%c0_1, %c0_2] : memref<8x64xf32, #tpu.memory_space<vmem>>, vector<8x64xf32>
    %2 = arith.addf %0, %1 : vector<8x64xf32>
    %c0_3 = arith.constant 0 : index
    %c0_4 = arith.constant 0 : index
    %3 = vector.load %arg4[%c0_3, %c0_4] : memref<8x64xf32, #tpu.memory_space<vmem>>, vector<8x64xf32>
    tpu.vector_store %arg4[%c0_3, %c0_4], %2 {strides = array<i32>} : memref<8x64xf32, #tpu.memory_space<vmem>>, vector<8x64xf32>,
    return
  }
  func.func @transform_0(%arg0: i32, %arg1: i32) -> (i32, i32) {
    %c0_i32 = arith.constant 0 : i32
    return %arg0, %arg1 : i32, i32
  }
  func.func @transform_1(%arg0: i32, %arg1: i32) -> (i32, i32) {
    %c0_i32 = arith.constant 0 : i32
    return %arg0, %arg1 : i32, i32
  }
  func.func @transform_2(%arg0: i32, %arg1: i32) -> (i32, i32) {
    %c0_i32 = arith.constant 0 : i32
    return %arg0, %arg1 : i32, i32
  }
}

</mosaic_0001>

<bundles_post_ra>
// kernel: tpu_custom_call.1
= control target key start
LH: loop header
LB: loop body
LE: loop exit
PB: predicated region body
PF: predicated region fallthrough
CT: control target
= control target key end

     0   :  { %7 = vsyncpa [#allocation3], 0  ;;  %s171_s0 = inlined_call_operand.hbm [shape: f32[8,64], index: 0, kind: input, shape index: {}]   ;;  %s172_s1 = inlined_call_operand.hbm [shape: f32[8,64], index: 1, kind: input, shape index: {}]   ;;  %s173_s2 = inlined_call_operand.hbm [shape: f32[8,64], index: 2, kind: output, shape index: {}]  }
   0x1   :  { %8 = vsyncpa [#allocation6], 0 }
   0x2   :  { %9 = vsyncpa [#allocation4], 0  ;;  %s15_s11 = sshll.u32 %s171_s0, 4  ;;  %s144_s12 = smov [#allocation2]   ;;  %s16_s11 = int_to_ptr.hbm [resolvable:$true] %s15_s11 }
   0x3   :  { %s17_s13 = sshll.u32 %s144_s12, 4  ;;  %s26_s16 = sshll.u32 %s172_s1, 4  ;;  %s18_s13 = int_to_ptr.vmem [resolvable:$true] %s17_s13  ;;  %s27_s16 = int_to_ptr.hbm [resolvable:$true] %s26_s16 }
   0x4   :  { %20 = dma.hbm_to_vmem [thread:$0]  %s16_s11, 128, %s18_s13, [#allocation3]  }
   0x5   :  { %s145_s17 = smov [#allocation5]  }
   0x6   :  { %s28_s18 = sshll.u32 %s145_s17, 4  ;;  %s29_s18 = int_to_ptr.vmem [resolvable:$true] %s28_s18 }
   0x7   :  { %31 = dma.hbm_to_vmem [thread:$0]  %s27_s16, 128, %s29_s18, [#allocation6]  }
   0x8   :  { %138 = dma.done.wait [#allocation3], 128  }
   0x9   :  { %139 = vsyncadd [#allocation3], 4294967168 }
   0xa   :  { %140 = dma.done.wait [#allocation6], 128  }
   0xb   :  { %141 = vsyncadd [#allocation6], 4294967168  ;;  %s146_s19 = smov [#allocation7]   ;;  %s52_s22 = sshll.u32 %s173_s2, 4  ;;  %v40_v0 = vld [vmem:[#allocation2] sm:$0xff]  ;;  %v41_v1 = vld [vmem:[#allocation5] sm:$0xff]  ;;  %s53_s22 = int_to_ptr.hbm [resolvable:$true] %s52_s22 }
   0xc   :  { %s50_s0 = sshll.u32 %s146_s19, 4  ;;  %vm43_vm0 = vcmask 523264   ;;  %v42_v2 = vadd.f32 %v41_v1, %v40_v0  ;;  %s51_s0 = int_to_ptr.vmem [resolvable:$true] %s50_s0 }
   0xe   :  { %44 = vst.msk [vmem:[#allocation7] sm:$0xff] %vm43_vm0, %v42_v2 }
   0xf   :  { %55 = dma.vmem_to_hbm [thread:$0]  %s51_s0, 128, %s53_s22, [#allocation4]  }
  0x10   :  { %142 = dma.done.wait [#allocation4], 128  }
  0x11   :  { %143 = vsyncadd [#allocation4], 4294967168 }
  0x12   :  { %60 = vsyncpa [#allocation3], 1 }
  0x13   :  { %61 = vsyncpa [#allocation6], 1 }
  0x14   :  { %62 = vsyncpa [#allocation4], 1 }

</bundles_post_ra>
